<compile_context>
chip_gen: v7x
topology: tpu7x:2x2x1
jax: 0.10.0
libtpu: 0.0.40
codegen_flags: <defaults>
</compile_context>

<pallas_src>
import functools
import math

import jax
import jax.numpy as jnp
from jax.experimental import pallas as pl
from jax.experimental.pallas import tpu as pltpu


def _dlinear_kernel(x_ref, w_ref, b_ref, o_ref):
    """One batch tile:  o = x @ W_bd + b  (f32 accumulation on the MXU).

    x_ref: [TB, Lp], w_ref: [Lp, Op], b_ref: [1, Op], o_ref: [TB, Op]
    """
    acc = jnp.dot(x_ref[...], w_ref[...], preferred_element_type=jnp.float32)
    o_ref[...] = (acc + b_ref[...].astype(jnp.float32)).astype(o_ref.dtype)


def _round_up(v, m):
    return ((v + m - 1) // m) * m


@functools.partial(jax.jit, static_argnames=("block_rows",))
def dlinear_forward(x, weight, bias, *, block_rows=None):
    """x: [..., input_len] (or [..., input_len, 1]); weight: [O, input_len]; bias: [O]."""
    # Mirror PyTorch: squeeze(-1) only removes a trailing size-1 dim.
    if x.ndim > 2 and x.shape[-1] == 1:
        x = jnp.squeeze(x, axis=-1)

    lead_shape = x.shape[:-1]
    L = x.shape[-1]
    O, Lw = weight.shape
    if Lw != L:
        raise ValueError(f"input_len mismatch: x has {L}, weight expects {Lw}")

    x2 = x.reshape(-1, L)
    B = x2.shape[0]
    dtype = x2.dtype
    itemsize = jnp.dtype(dtype).itemsize

    # ---- lane-dense packing: fold g batch rows into one row of length g*L ----
    g = 1
    if L < 128 and 128 % L == 0:
        base = 128 // L
        for mult in (16, 8, 4, 2, 1):
            cand = base * mult
            wbd_bytes = (cand * L) * (cand * O) * itemsize
            if B % cand == 0 and wbd_bytes <= (1 << 20):
                g = cand
                break

    Bp, Lp, Op = B // g, g * L, g * O
    x_p = x2.reshape(Bp, Lp)                       # free, contiguous reshape

    w_t = weight.T                                 # [L, O]: MXU-native [K, N] layout
    if g > 1:
        # Block-diagonal kron(I_g, W^T): one matmul computes g rows' outputs.
        w_bd = jnp.kron(jnp.eye(g, dtype=w_t.dtype), w_t)   # [Lp, Op]
        b_p = jnp.tile(bias, g).reshape(1, Op)
    else:
        w_bd = w_t
        b_p = bias.reshape(1, Op)

    # ---- batch tile: multi-MiB x tiles, capped for the smallest-VMEM generation ----
    lane_bytes = 128 * itemsize
    in_row_bytes = _round_up(Lp * itemsize, lane_bytes)      # VMEM footprint per packed row
    out_row_bytes = _round_up(Op * itemsize, lane_bytes)
    w_bytes = _round_up(Lp, 8) * _round_up(Op, 128) * jnp.dtype(w_bd.dtype).itemsize

    target_x_bytes = 8 << 20            # ~8 MiB of x per pipeline buffer
    vmem_budget = 24 << 20              # 2x(in+out) buffers + resident W

    tb = max(8, _round_up(target_x_bytes // in_row_bytes, 8))
    per_row = 2 * (in_row_bytes + out_row_bytes)             # double-buffered in + out
    tb_cap = max(8, ((vmem_budget - 2 * w_bytes) // per_row) // 8 * 8)
    tb = min(tb, tb_cap)
    if block_rows is not None:                               # test / tuning override
        tb = max(8, _round_up(min(block_rows, tb), 8))

    if tb >= Bp:
        tb = Bp                                              # one full block, no row padding
        if Bp * in_row_bytes >= (2 << 20):
            # Enough work to be worth sharding across both v7x TensorCores.
            tb = _round_up((Bp + 1) // 2, 8)

    grid = (pl.cdiv(Bp, tb),)

    cost = pl.CostEstimate(
        flops=2 * B * L * O,
        transcendentals=0,
        bytes_accessed=(x_p.size + w_bd.size + b_p.size + Bp * Op) * itemsize,
    )

    y_p = pl.pallas_call(
        _dlinear_kernel,
        out_shape=jax.ShapeDtypeStruct((Bp, Op), dtype),
        grid_spec=pltpu.PrefetchScalarGridSpec(
            num_scalar_prefetch=0,
            grid=grid,
            in_specs=[
                pl.BlockSpec((tb, Lp), lambda i: (i, 0)),    # x: tiled over (packed) batch
                pl.BlockSpec((Lp, Op), lambda i: (0, 0)),    # W_bd: resident across grid
                pl.BlockSpec((1, Op), lambda i: (0, 0)),     # bias: resident
            ],
            out_specs=pl.BlockSpec((tb, Op), lambda i: (i, 0)),
        ),
        compiler_params=pltpu.CompilerParams(
            dimension_semantics=("parallel",),               # megacore-shardable on v7x
            vmem_limit_bytes=32 << 20,                       # headroom on all generations
        ),
        cost_estimate=cost,
    )(x_p, w_bd, b_p)

    return y_p.reshape(*lead_shape, O)


if __name__ == "__main__":
    key = jax.random.PRNGKey(0)
    kx, kw, kb = jax.random.split(key, 3)

    # --- DLinear default config: input_len = WINDOW_SIZE = 16, output_dim = 1 ---
    B, L, O = 8, 16, 1
    x = jax.random.normal(kx, (B, L, 1), dtype=jnp.float32)       # exercises squeeze(-1)
    bound = 1.0 / math.sqrt(L)
    w = jax.random.uniform(kw, (O, L), jnp.float32, -bound, bound)
    b = jax.random.uniform(kb, (O,), jnp.float32, -bound, bound)

    y = jax.block_until_ready(dlinear_forward(x, w, b))
    ref = jnp.squeeze(x, -1) @ w.T + b
    assert y.shape == (B, O)
    assert jnp.allclose(y, ref, atol=2e-5, rtol=2e-5)

    # --- unpacked (g=1) path: large input_len, wider output ---
    B2, L2, O2 = 64, 256, 32
    x2 = jax.random.normal(kx, (B2, L2), dtype=jnp.float32)
    w2 = jax.random.uniform(kw, (O2, L2), jnp.float32, -0.1, 0.1)
    b2 = jax.random.uniform(kb, (O2,), jnp.float32, -0.1, 0.1)
    y2 = jax.block_until_ready(dlinear_forward(x2, w2, b2))
    ref2 = x2 @ w2.T + b2
    assert y2.shape == (B2, O2)
    assert jnp.allclose(y2, ref2, atol=1e-4, rtol=1e-4)

    # --- packed path with a multi-step grid and a partial last tile ---
    B3, L3, O3 = 260, 32, 4
    x3 = jax.random.normal(kx, (B3, L3), dtype=jnp.float32)
    w3 = jax.random.uniform(kw, (O3, L3), jnp.float32, -0.1, 0.1)
    b3 = jax.random.uniform(kb, (O3,), jnp.float32, -0.1, 0.1)
    y3 = jax.block_until_ready(dlinear_forward(x3, w3, b3, block_rows=8))
    ref3 = x3 @ w3.T + b3
    assert y3.shape == (B3, O3)
    assert jnp.allclose(y3, ref3, atol=1e-4, rtol=1e-4)

    print("KERNEL_OK")
</pallas_src>

<mosaic_0001>
module attributes {stable_mosaic.version = 11 : i64} {
  func.func @_dlinear_kernel(%arg0: i32, %arg1: memref<1x128xf32, #tpu.memory_space<vmem>>, %arg2: memref<128x8xf32, #tpu.memory_space<vmem>>, %arg3: memref<1x8xf32, #tpu.memory_space<vmem>>, %arg4: memref<1x8xf32, #tpu.memory_space<vmem>>) attributes {dimension_semantics = [#tpu.dimension_semantics<parallel>], iteration_bounds = array<i64: 1>, scalar_prefetch = 0 : i64, scratch_operands = 0 : i64, tpu.core_type = #tpu.core_type<tc>, window_params = [{transform_indices = @transform_0, window_bounds = array<i64: 1, 128>}, {pipeline_mode = #tpu.pipeline_mode<synchronous>, transform_indices = @transform_1, window_bounds = array<i64: 128, 8>}, {pipeline_mode = #tpu.pipeline_mode<synchronous>, transform_indices = @transform_2, window_bounds = array<i64: 1, 8>}, {transform_indices = @transform_3, window_bounds = array<i64: 1, 8>}]} {
    %c0 = arith.constant 0 : index
    %c0_0 = arith.constant 0 : index
    %0 = vector.load %arg1[%c0, %c0_0] : memref<1x128xf32, #tpu.memory_space<vmem>>, vector<1x128xf32>
    %c0_1 = arith.constant 0 : index
    %c0_2 = arith.constant 0 : index
    %1 = vector.load %arg2[%c0_1, %c0_2] : memref<128x8xf32, #tpu.memory_space<vmem>>, vector<128x8xf32>
    %cst = arith.constant dense<0.000000e+00> : vector<1x8xf32>
    %2 = tpu.matmul %0, %1, %cst {dimension_numbers = #tpu.dot_dimension_numbers<[1], [0], [0], [1], [0, 0, 1, 1], [], []>} : vector<1x128xf32>, vector<128x8xf32>, vector<1x8xf32> -> vector<1x8xf32>
    %c0_3 = arith.constant 0 : index
    %c0_4 = arith.constant 0 : index
    %3 = vector.load %arg3[%c0_3, %c0_4] : memref<1x8xf32, #tpu.memory_space<vmem>>, vector<1x8xf32>
    %4 = arith.addf %2, %3 : vector<1x8xf32>
    %c0_5 = arith.constant 0 : index
    %c0_6 = arith.constant 0 : index
    %5 = vector.load %arg4[%c0_5, %c0_6] : memref<1x8xf32, #tpu.memory_space<vmem>>, vector<1x8xf32>
    tpu.vector_store %arg4[%c0_5, %c0_6], %4 {strides = array<i32>} : memref<1x8xf32, #tpu.memory_space<vmem>>, vector<1x8xf32>,
    return
  }
  func.func @transform_0(%arg0: i32) -> (i32, i32) {
    %c0_i32 = arith.constant 0 : i32
    %c0_i32_0 = arith.constant 0 : i32
    return %arg0, %c0_i32 : i32, i32
  }
  func.func @transform_1(%arg0: i32) -> (i32, i32) {
    %c0_i32 = arith.constant 0 : i32
    %c0_i32_0 = arith.constant 0 : i32
    %c0_i32_1 = arith.constant 0 : i32
    return %c0_i32, %c0_i32_0 : i32, i32
  }
  func.func @transform_2(%arg0: i32) -> (i32, i32) {
    %c0_i32 = arith.constant 0 : i32
    %c0_i32_0 = arith.constant 0 : i32
    %c0_i32_1 = arith.constant 0 : i32
    return %c0_i32, %c0_i32_0 : i32, i32
  }
  func.func @transform_3(%arg0: i32) -> (i32, i32) {
    %c0_i32 = arith.constant 0 : i32
    %c0_i32_0 = arith.constant 0 : i32
    return %arg0, %c0_i32 : i32, i32
  }
}

</mosaic_0001>

<bundles_post_ra>
// kernel: squeeze.1
= control target key start
LH: loop header
LB: loop body
LE: loop exit
PB: predicated region body
PF: predicated region fallthrough
CT: control target
= control target key end

     0   :  { %s67_s10 = smov 112   ;;  %s68_s11 = smov 80   ;;  %vm3_vm0 = vcmask 130048   ;;  %vm9_vm1 = vcmask 1048448   ;;  %vm15_vm2 = vcmask 917248   ;;  %vm21_vm3 = vcmask 786048   ;;  %s111_s0 = inlined_call_operand.vmem [shape: f32[8,16], index: 0, kind: input, shape index: {}]   ;;  %s112_s1 = inlined_call_operand.vmem [shape: f32[1,128], index: 1, kind: output, shape index: {}]  }
   0x1   :  { %v53_v0 = vld [vmem:[%s111_s0 + $0x7] sm:$0x1]   ;;  %v55_v1 = vld [vmem:[%s111_s0 + $0x5] sm:$0x1]   ;;  %v54_v2 = vld [vmem:[%s111_s0 + $0x6] sm:$0x1]  }
   0x2   :  { %7 = vrot.lane.b32.xlu0 %v53_v0, %s67_s10  ;;  %19 = vrot.lane.b32.xlu1 %v55_v1, %s68_s11  ;;  %v56_v3 = vld [vmem:[%s111_s0 + $0x4] sm:$0x1]   ;;  %v2_v4 = vld [vmem:[%s111_s0] sm:$0x1]   ;;  %s69_s18 = smov 96   ;;  %s70_s19 = smov 64  }
   0x3   :  { %4 = vst.msk [vmem:[#allocation0] sm:$0x1] %vm3_vm0, %v2_v4   ;;  %v57_v5 = vld [vmem:[%s111_s0 + $0x3] sm:$0x1]   ;;  %v58_v6 = vld [vmem:[%s111_s0 + $0x2] sm:$0x1]  }
   0x4   :  { %s71_s24 = smov 48   ;;  %s72_s25 = smov 32   ;;  %v59_v7 = vld [vmem:[%s111_s0 + $0x1] sm:$0x1]   ;;  %vm27_vm4 = vcmask 654848   ;;  %vm33_vm5 = vcmask 523648  }
   0x5   :  { %s73_s0 = smov 16   ;;  %vm39_vm6 = vcmask 392448   ;;  %vm45_vm7 = vcmask 261248  }
   0x6   :  { %13 = vrot.lane.b32.xlu0 %v54_v2, %s69_s18  ;;  %25 = vrot.lane.b32.xlu1 %v56_v3, %s70_s19 }
   0xa   :  { %31 = vrot.lane.b32.xlu0 %v57_v5, %s71_s24  ;;  %37 = vrot.lane.b32.xlu1 %v58_v6, %s72_s25 }
   0xe   :  { %43 = vrot.lane.b32.xlu0 %v59_v7, %s73_s0 }
  0x74   :  { %v8_v8 = vpop.permute.xlu0 %7   ;;  %v20_v9 = vpop.permute.xlu1 %19  }
  0x75   :  { %10 = vst.msk [vmem:[#allocation0] sm:$0x1] %vm9_vm1, %v8_v8  }
  0x78   :  { %v14_v10 = vpop.permute.xlu0 %13   ;;  %v26_v11 = vpop.permute.xlu1 %25  }
  0x79   :  { %16 = vst.msk [vmem:[#allocation0] sm:$0x1] %vm15_vm2, %v14_v10  }
  0x7a   :  { %22 = vst.msk [vmem:[#allocation0] sm:$0x1] %vm21_vm3, %v20_v9  }
  0x7b   :  { %28 = vst.msk [vmem:[#allocation0] sm:$0x1] %vm27_vm4, %v26_v11  }
  0x7c   :  { %v32_v12 = vpop.permute.xlu0 %31   ;;  %v38_v13 = vpop.permute.xlu1 %37  }
  0x7d   :  { %34 = vst.msk [vmem:[#allocation0] sm:$0x1] %vm33_vm5, %v32_v12  }
  0x7e   :  { %40 = vst.msk [vmem:[#allocation0] sm:$0x1] %vm39_vm6, %v38_v13  }
  0x80   :  { %v44_v14 = vpop.permute.xlu0 %43  }
  0x81   :  { %46 = vst.msk [vmem:[#allocation0] sm:$0x1] %vm45_vm7, %v44_v14  }
  0x88   :  { %v50_v15 = vld [vmem:[#allocation0] sm:$0x1] }
  0x89   :  { %52 = vst [vmem:[%s112_s1] sm:$0x1] %v50_v15 }

// kernel: dlinear_forward.1
= control target key start
LH: loop header
LB: loop body
LE: loop exit
PB: predicated region body
PF: predicated region fallthrough
CT: control target
= control target key end

     0   :  { %v223_v3 = vmov 0.0|0.0   ;;  %vm224_vm0 = vmmov 0   ;;  %v225_v6 = vmov 0.0   ;;  %s313_s0 = inlined_call_operand.vmem [shape: f32[1,128], index: 0, kind: input, shape index: {}]   ;;  %s314_s1 = inlined_call_operand.vmem [shape: f32[128,8], index: 1, kind: input, shape index: {}]   ;;  %s315_s2 = inlined_call_operand.vmem [shape: f32[1,8], index: 2, kind: input, shape index: {}]   ;;  %s316_s3 = inlined_call_operand.hbm [shape: f32[1,8], index: 3, kind: output, shape index: {}]  }
   0x1   :  { %v16_v0 = vld [vmem:[%s314_s1] sm:$0xff]  ;;  %v17_v1 = vld [vmem:[%s314_s1 + $0x8] sm:$0xff]  ;;  %v18_v2 = vld [vmem:[%s314_s1 + $0x10] sm:$0xff]  ;;  %171 = vmatprep.subr.bf16.mxu0 %v223_v3  ;;  %168 = vmatprep.mubr.msk.f32.mxu0 %vm224_vm0, %v225_v6 }
   0x2   :  { %v172_v4 = vpack.c.bf16 %v17_v1, %v16_v0  ;;  %v19_v5 = vld [vmem:[%s314_s1 + $0x18] sm:$0xff]  ;;  %v20_v8 = vld [vmem:[%s314_s1 + $0x20] sm:$0xff]  ;;  %v21_v9 = vld [vmem:[%s314_s1 + $0x28] sm:$0xff] }
   0x3   :  { %v175_v7 = vpack.c.bf16 %v19_v5, %v18_v2 }
   0x4   :  { %173 = vmatpush3.bf16.msra.mxu0 %v172_v4 }
   0x5   :  { %174 = vmatprep.subr.bf16.mxu0 %v223_v3 }
   0x6   :  { %8 = vsyncpa [#allocation3], 0  ;;  %v178_v10 = vpack.c.bf16 %v21_v9, %v20_v8  ;;  %v22_v11 = vld [vmem:[%s314_s1 + $0x30] sm:$0xff]  ;;  %v23_v12 = vld [vmem:[%s314_s1 + $0x38] sm:$0xff]  ;;  %s226_s21 = smov [#allocation2]   ;;  %vm103_vm1 = vcmask 57344  }
   0x7   :  { %v181_v13 = vpack.c.bf16 %v23_v12, %v22_v11  ;;  %v24_v14 = vld [vmem:[%s314_s1 + $0x40] sm:$0xff]  ;;  %v25_v15 = vld [vmem:[%s314_s1 + $0x48] sm:$0xff]  ;;  %v26_v17 = vld [vmem:[%s314_s1 + $0x50] sm:$0xff]  ;;  %s111_s22 = sshll.u32 %s226_s21, 4  ;;  %s112_s22 = int_to_ptr.vmem [resolvable:$true] %s111_s22 }
   0x8   :  { %176 = vmatpush3.bf16.msra.mxu0 %v175_v7  ;;  %v184_v16 = vpack.c.bf16 %v25_v15, %v24_v14  ;;  %v27_v18 = vld [vmem:[%s314_s1 + $0x58] sm:$0xff]  ;;  %v28_v20 = vld [vmem:[%s314_s1 + $0x60] sm:$0xff]  ;;  %v29_v21 = vld [vmem:[%s314_s1 + $0x68] sm:$0xff]  ;;  %s203_s23 = scalar_lea.vmem %s112_s22, 32  ;;  %p204_p1 = scmp.lt.s32.totalorder %s112_s22, %s112_s22 }
   0x9   :  { %177 = vmatprep.subr.bf16.mxu0 %v223_v3  ;;  %v187_v19 = vpack.c.bf16 %v27_v18, %v26_v17  ;;  %v190_v22 = vpack.c.bf16 %v29_v21, %v28_v20  ;;  %v30_v23 = vld [vmem:[%s314_s1 + $0x70] sm:$0xff]  ;;  %v31_v24 = vld [vmem:[%s314_s1 + $0x78] sm:$0xff]  ;;  %v15_v26 = vld [vmem:[%s313_s0] sm:$0x1]  ;;  %s199_s1 = scalar_lea.vmem %s112_s22, 16 }
   0xa   :  { %v193_v25 = vpack.c.bf16 %v31_v24, %v30_v23  ;;  %v32_v27 = vld [vmem:[%s315_s2] sm:$0x1]  ;;  %p200_p0 = scmp.ne.s32.totalorder %s112_s22, %s199_s1  ;;  %p205_p2 = scmp.lt.s32.totalorder %s203_s23, %s199_s1 }
   0xc   :  { %179 = vmatpush3.bf16.msra.mxu0 %v178_v10  ;;  %p206_p3 = por %p205_p2, %p204_p1 }
   0xd   :  { %180 = vmatprep.subr.bf16.mxu0 %v223_v3 }
   0xe   :  { %p207_p4 = pnand %p206_p3, %p200_p0 }
  0x10   :  { %182 = vmatpush3.bf16.msra.mxu0 %v181_v13 }
  0x11   :  { %183 = vmatprep.subr.bf16.mxu0 %v223_v3 }
  0x14   :  { %185 = vmatpush3.bf16.msra.mxu0 %v184_v16 }
  0x15   :  { %186 = vmatprep.subr.bf16.mxu0 %v223_v3 }
  0x18   :  { %188 = vmatpush3.bf16.msra.mxu0 %v187_v19 }
  0x19   :  { %189 = vmatprep.subr.bf16.mxu0 %v223_v3 }
  0x1c   :  { %191 = vmatpush3.bf16.msra.mxu0 %v190_v22 }
  0x1d   :  { %192 = vmatprep.subr.bf16.mxu0 %v223_v3 }
  0x20   :  { %194 = vmatpush3.bf16.msra.mxu0 %v193_v25 }
  0x23   :  { %169 = vmatmul.mubr.f32.vlgmr.msra.gmra.mrb[0].mxu0 %v15_v26 }
  0xf6   :  { %v99_v28 = vpop.f32.mrb[0].mxu0 }
  0xf7   :  { %v100_v29 = vadd.f32 %v99_v28, %v32_v27  ;;  %v170_v30 = vpop.f32.mrb[1].mxu0 }
  0xf9   :  { %104 = vst.msk [vmem:[#allocation2] sm:$0x1] %vm103_vm1, %v100_v29 }
  0xfa   :  { %210 = shalt.err (!%p207_p4)
}
  0xfb   :  { %s211_s2 = scalar_lea.hbm %s316_s3, 16 }
  0xfc   :  { %p212_p5 = scmp.ne.s32.totalorder %s316_s3, %s211_s2  ;;  %p215_p6 = scmp.lt.u32.totalorder %s211_s2, %s316_s3 }
  0xfe   :  { %p217_p7 = pnand %p215_p6, %p212_p5 }
 0x100   :  { %220 = shalt.err (!%p217_p7)
}
 0x101   :  { %114 = dma.vmem_to_hbm [thread:$0]  %s112_s22, 16, %s316_s3, [#allocation3]  }
 0x102   :  { %221 = dma.done.wait [#allocation3], 16  }
 0x103   :  { %222 = vsyncadd [#allocation3], 4294967280 }
 0x104   :  { %118 = vsyncpa [#allocation3], 1 }

</bundles_post_ra>
